<compile_context>
chip_gen: v6e
topology: v6e:2x2x1
jax: 0.10.0
libtpu: 0.0.40
codegen_flags: <defaults>
</compile_context>

<pallas_src>
import functools
import math

import jax
import jax.numpy as jnp
from jax.experimental import pallas as pl
from jax.experimental.pallas import tpu as pltpu

LANE = 128


def _pad_to(n, m):
    return -(-n // m) * m


# ----------------------------------------------------------------------------
# Kernel: one grid step == one batch element (grid axis is "parallel").
# All intermediates live in vregs; the single store per step is full-lane.
# ----------------------------------------------------------------------------
def mha_kernel(qkv_ref, wqkv_ref, wob_ref, o_ref, *, H, hd, E, scale):
    # Head-fused projections: block-diagonal weights encode the shared
    # per-head (hd, hd) linear; each projection is ONE 128-lane matmul.
    q = jnp.dot(qkv_ref[0], wqkv_ref[0], preferred_element_type=jnp.float32)
    k = jnp.dot(qkv_ref[1], wqkv_ref[1], preferred_element_type=jnp.float32)
    v = jnp.dot(qkv_ref[2], wqkv_ref[2], preferred_element_type=jnp.float32)

    # Per-head scores / softmax / AV.  Outputs accumulate in registers and are
    # lane-concatenated (no VMEM scratch, no masked partial stores).
    heads = []
    for h in range(H):
        c = slice(h * hd, (h + 1) * hd)
        qh, kh, vh = q[:, c], k[:, c], v[:, c]
        # energy[i, j] = <q_i, k_j>; scale = 1/sqrt(embed_size), as in torch.
        e = jax.lax.dot_general(qh, kh, (((1,), (1,)), ((), ())),
                                preferred_element_type=jnp.float32) * scale
        # TODO(synk): mask is None in this model's forward; masked_fill would
        # be `e = jnp.where(mask == 0, -1e20, e)` here.
        e = e - jnp.max(e, axis=-1, keepdims=True)
        p = jnp.exp(e)
        inv = pl.reciprocal(jnp.sum(p, axis=-1, keepdims=True))  # exact; approx=True ok if tol allows
        heads.append(jnp.dot(p * inv, vh, preferred_element_type=jnp.float32))

    att = jnp.concatenate(heads, axis=-1)            # (S, E), register-resident

    wob = wob_ref[...]                               # fc_out weight + bias, one packed array
    wo = wob[:E, :]                                  # (E, Ep) == fc_out.weight.T (lane-padded)
    bo = wob[E:E + 1, :]                             # (1, Ep) bias row (pad lanes are zero)

    # fc_out: one matmul over the concatenated head outputs; output slab is
    # lane-dense (128 wide) -> single unmasked full-lane store.
    o_ref[...] = (jnp.dot(att.astype(wo.dtype), wo,
                          preferred_element_type=jnp.float32)
                  + bo.astype(jnp.float32))


# ----------------------------------------------------------------------------
# Host-side packing: block-diagonalize / transpose / lane-pad weights ONCE.
# ----------------------------------------------------------------------------
def pack_params(params, *, E, H, use_bf16=False):
    hd = E // H
    Ep = _pad_to(E, LANE)
    wob_rows = _pad_to(E + 1, 8)

    def bdiag(w):                       # (hd, hd) torch weight -> (Ep, Ep) of w.T blocks
        bd = jnp.zeros((Ep, Ep), jnp.float32)
        for h in range(H):
            sl = slice(h * hd, (h + 1) * hd)
            bd = bd.at[sl, sl].set(w.T)
        return bd

    # Order must match the activation stacking in the wrapper: [query, keys, values].
    wqkv = jnp.stack([bdiag(params['wq']), bdiag(params['wk']), bdiag(params['wv'])], axis=0)

    wob = jnp.zeros((wob_rows, Ep), jnp.float32)
    wob = wob.at[:E, :E].set(params['wo'].T)
    wob = wob.at[E, :E].set(params['bo'])

    mxu_dtype = jnp.bfloat16 if use_bf16 else jnp.float32
    return dict(
        dims=dict(E=E, H=H, Ep=Ep, WOB_ROWS=wob_rows),
        wqkv_bd=wqkv.astype(mxu_dtype),
        wob=wob.astype(mxu_dtype),
        mxu_dtype=mxu_dtype,
    )


# ----------------------------------------------------------------------------
# Wrapper: layout plumbing + pallas_call.
# ----------------------------------------------------------------------------
def multi_head_attention(packed, values, keys, query, mask=None):
    if mask is not None:
        # TODO(synk): masked_fill path not exercised by this model (mask is None).
        raise NotImplementedError("mask is None in this model's forward")

    d = packed['dims']
    E, H, Ep, WR = d['E'], d['H'], d['Ep'], d['WOB_ROWS']
    hd = E // H
    N, S, _ = query.shape
    R = N * S
    dt = packed['mxu_dtype']

    def slab(x):                        # (N, S, E) -> lane-padded (N*S, Ep)
        return jnp.pad(x.reshape(R, E), ((0, 0), (0, Ep - E))).astype(dt)

    # One stacked activation array -> one input DMA for q, k and v.
    qkv = jnp.stack([slab(query), slab(keys), slab(values)], axis=0)   # (3, R, Ep)

    itemsize = jnp.dtype(dt).itemsize
    flops = (3 * 2 * R * Ep * Ep            # q/k/v projections
             + N * H * 2 * (2 * S * S * hd)  # scores + AV
             + 2 * R * E * Ep)               # fc_out
    bytes_accessed = (qkv.size * itemsize
                      + packed['wqkv_bd'].size * itemsize
                      + packed['wob'].size * itemsize
                      + R * Ep * 4)
    cost = pl.CostEstimate(flops=flops, transcendentals=N * H * S * S,
                           bytes_accessed=bytes_accessed)

    kern = functools.partial(mha_kernel, H=H, hd=hd, E=E, scale=1.0 / math.sqrt(E))

    out = pl.pallas_call(
        kern,
        grid=(N,),
        in_specs=[
            # per-batch block of the stacked q/k/v slab
            pl.BlockSpec((3, S, Ep), lambda n: (0, n, 0)),
            # weights: constant block index -> DMA'd once, resident across steps
            pl.BlockSpec((3, Ep, Ep), lambda n: (0, 0, 0)),
            pl.BlockSpec((WR, Ep), lambda n: (0, 0)),
        ],
        out_specs=pl.BlockSpec((S, Ep), lambda n: (n, 0)),
        out_shape=jax.ShapeDtypeStruct((R, Ep), jnp.float32),
        compiler_params=pltpu.CompilerParams(
            dimension_semantics=("parallel",),       # engage both TCs on v7x
            vmem_limit_bytes=32 * 1024 * 1024),
        cost_estimate=cost,
    )(qkv, packed['wqkv_bd'], packed['wob'])

    return out[:, :E].reshape(N, S, E)


# ----------------------------------------------------------------------------
# Parameter init (torch-like: nn.Linear weights are (out, in), uniform ±1/sqrt(in))
# ----------------------------------------------------------------------------
def _uniform(key, shape, bound):
    return jax.random.uniform(key, shape, jnp.float32, -bound, bound)


def init_params(key, E, H):
    hd = E // H
    ks = jax.random.split(key, 5)
    return dict(
        wq=_uniform(ks[0], (hd, hd), 1 / math.sqrt(hd)),
        wk=_uniform(ks[1], (hd, hd), 1 / math.sqrt(hd)),
        wv=_uniform(ks[2], (hd, hd), 1 / math.sqrt(hd)),
        wo=_uniform(ks[3], (E, E), 1 / math.sqrt(E)),
        bo=_uniform(ks[4], (E,), 1 / math.sqrt(E)),
    )


# ----------------------------------------------------------------------------
# Pure-JAX reference (mirrors the PyTorch forward exactly).
# ----------------------------------------------------------------------------
def mha_ref(values, keys, query, params, *, E, H):
    N, S, _ = query.shape
    hd = E // H
    v = values.reshape(N, S, H, hd) @ params['wv'].T
    k = keys.reshape(N, S, H, hd) @ params['wk'].T
    q = query.reshape(N, S, H, hd) @ params['wq'].T
    e = jnp.einsum('nqhd,nkhd->nhqk', q, k)
    a = jax.nn.softmax(e / math.sqrt(E), axis=3)
    out = jnp.einsum('nhql,nlhd->nqhd', a, v).reshape(N, S, E)
    return out @ params['wo'].T + params['bo']


if __name__ == "__main__":
    E, H, S, N = 32, 4, 8, 2               # embed_size, heads, seq_len, batch

    key = jax.random.PRNGKey(0)
    kp, kv, kk, kq = jax.random.split(key, 4)
    params = init_params(kp, E, H)
    values = jax.random.normal(kv, (N, S, E), jnp.float32)
    keys = jax.random.normal(kk, (N, S, E), jnp.float32)
    query = jax.random.normal(kq, (N, S, E), jnp.float32)

    with jax.default_matmul_precision('highest'):
        ref = mha_ref(values, keys, query, params, E=E, H=H)
    ref = jax.block_until_ready(ref)

    # f32 MXU operands (exact path)
    packed = pack_params(params, E=E, H=H, use_bf16=False)
    out = jax.block_until_ready(multi_head_attention(packed, values, keys, query))
    err = float(jnp.max(jnp.abs(out - ref)))
    assert err < 5e-3, f"f32 path max abs error {err}"

    # bf16 MXU operands (v6e/v7x throughput path); f32 accumulation, looser tol.
    packed_bf16 = pack_params(params, E=E, H=H, use_bf16=True)
    out_bf16 = jax.block_until_ready(multi_head_attention(packed_bf16, values, keys, query))
    err_bf16 = float(jnp.max(jnp.abs(out_bf16 - ref)))
    assert err_bf16 < 3e-2, f"bf16 path max abs error {err_bf16}"

    print("KERNEL_OK")
</pallas_src>

<mosaic_0001>
module attributes {stable_mosaic.version = 11 : i64} {
  func.func @mha_kernel(%arg0: i32, %arg1: memref<3x8x128xf32, #tpu.memory_space<vmem>>, %arg2: memref<3x128x128xf32, #tpu.memory_space<vmem>>, %arg3: memref<40x128xf32, #tpu.memory_space<vmem>>, %arg4: memref<8x128xf32, #tpu.memory_space<vmem>>) attributes {dimension_semantics = [#tpu.dimension_semantics<parallel>], iteration_bounds = array<i64: 2>, scalar_prefetch = 0 : i64, scratch_operands = 0 : i64, tpu.core_type = #tpu.core_type<tc>, window_params = [{transform_indices = @transform_0, window_bounds = array<i64: 3, 8, 128>}, {pipeline_mode = #tpu.pipeline_mode<synchronous>, transform_indices = @transform_1, window_bounds = array<i64: 3, 128, 128>}, {pipeline_mode = #tpu.pipeline_mode<synchronous>, transform_indices = @transform_2, window_bounds = array<i64: 40, 128>}, {transform_indices = @transform_3, window_bounds = array<i64: 8, 128>}]} {
    %c0 = arith.constant 0 : index
    %c0_0 = arith.constant 0 : index
    %c0_1 = arith.constant 0 : index
    %0 = vector.load %arg1[%c0, %c0_0, %c0_1] : memref<3x8x128xf32, #tpu.memory_space<vmem>>, vector<1x8x128xf32>
    %1 = vector.shape_cast %0 : vector<1x8x128xf32> to vector<8x128xf32>
    %c0_2 = arith.constant 0 : index
    %c0_3 = arith.constant 0 : index
    %c0_4 = arith.constant 0 : index
    %2 = vector.load %arg2[%c0_2, %c0_3, %c0_4] : memref<3x128x128xf32, #tpu.memory_space<vmem>>, vector<1x128x128xf32>
    %3 = vector.shape_cast %2 : vector<1x128x128xf32> to vector<128x128xf32>
    %cst = arith.constant dense<0.000000e+00> : vector<8x128xf32>
    %4 = tpu.matmul %1, %3, %cst {dimension_numbers = #tpu.dot_dimension_numbers<[1], [0], [0], [1], [0, 0, 1, 1], [], []>} : vector<8x128xf32>, vector<128x128xf32>, vector<8x128xf32> -> vector<8x128xf32>
    %c1 = arith.constant 1 : index
    %c0_5 = arith.constant 0 : index
    %c0_6 = arith.constant 0 : index
    %5 = vector.load %arg1[%c1, %c0_5, %c0_6] : memref<3x8x128xf32, #tpu.memory_space<vmem>>, vector<1x8x128xf32>
    %6 = vector.shape_cast %5 : vector<1x8x128xf32> to vector<8x128xf32>
    %c1_7 = arith.constant 1 : index
    %c0_8 = arith.constant 0 : index
    %c0_9 = arith.constant 0 : index
    %7 = vector.load %arg2[%c1_7, %c0_8, %c0_9] : memref<3x128x128xf32, #tpu.memory_space<vmem>>, vector<1x128x128xf32>
    %8 = vector.shape_cast %7 : vector<1x128x128xf32> to vector<128x128xf32>
    %cst_10 = arith.constant dense<0.000000e+00> : vector<8x128xf32>
    %9 = tpu.matmul %6, %8, %cst_10 {dimension_numbers = #tpu.dot_dimension_numbers<[1], [0], [0], [1], [0, 0, 1, 1], [], []>} : vector<8x128xf32>, vector<128x128xf32>, vector<8x128xf32> -> vector<8x128xf32>
    %c2 = arith.constant 2 : index
    %c0_11 = arith.constant 0 : index
    %c0_12 = arith.constant 0 : index
    %10 = vector.load %arg1[%c2, %c0_11, %c0_12] : memref<3x8x128xf32, #tpu.memory_space<vmem>>, vector<1x8x128xf32>
    %11 = vector.shape_cast %10 : vector<1x8x128xf32> to vector<8x128xf32>
    %c2_13 = arith.constant 2 : index
    %c0_14 = arith.constant 0 : index
    %c0_15 = arith.constant 0 : index
    %12 = vector.load %arg2[%c2_13, %c0_14, %c0_15] : memref<3x128x128xf32, #tpu.memory_space<vmem>>, vector<1x128x128xf32>
    %13 = vector.shape_cast %12 : vector<1x128x128xf32> to vector<128x128xf32>
    %cst_16 = arith.constant dense<0.000000e+00> : vector<8x128xf32>
    %14 = tpu.matmul %11, %13, %cst_16 {dimension_numbers = #tpu.dot_dimension_numbers<[1], [0], [0], [1], [0, 0, 1, 1], [], []>} : vector<8x128xf32>, vector<128x128xf32>, vector<8x128xf32> -> vector<8x128xf32>
    %15 = vector.extract_strided_slice %4 {offsets = [0, 0], sizes = [8, 8], strides = [1, 1]} : vector<8x128xf32> to vector<8x8xf32>
    %16 = vector.extract_strided_slice %9 {offsets = [0, 0], sizes = [8, 8], strides = [1, 1]} : vector<8x128xf32> to vector<8x8xf32>
    %17 = vector.extract_strided_slice %14 {offsets = [0, 0], sizes = [8, 8], strides = [1, 1]} : vector<8x128xf32> to vector<8x8xf32>
    %cst_17 = arith.constant dense<0.000000e+00> : vector<8x8xf32>
    %18 = tpu.matmul %15, %16, %cst_17 {dimension_numbers = #tpu.dot_dimension_numbers<[1], [1], [0], [0], [0, 0, 1, 0], [], []>} : vector<8x8xf32>, vector<8x8xf32>, vector<8x8xf32> -> vector<8x8xf32>
    %cst_18 = arith.constant 0.176776692 : f32
    %19 = vector.broadcast %cst_18 : f32 to vector<8x8xf32>
    %20 = arith.mulf %18, %19 : vector<8x8xf32>
    %cst_19 = arith.constant dense<0xFF800000> : vector<8xf32>
    %21 = vector.multi_reduction <maximumf>, %20, %cst_19 [1] : vector<8x8xf32> to vector<8xf32>
    %22 = vector.shape_cast %21 : vector<8xf32> to vector<8x1xf32>
    %23 = vector.broadcast %22 : vector<8x1xf32> to vector<8x8xf32>
    %24 = arith.subf %20, %23 : vector<8x8xf32>
    %25 = math.exp %24 : vector<8x8xf32>
    %cst_20 = arith.constant dense<0.000000e+00> : vector<8xf32>
    %26 = vector.multi_reduction <add>, %25, %cst_20 [1] : vector<8x8xf32> to vector<8xf32>
    %27 = vector.shape_cast %26 : vector<8xf32> to vector<8x1xf32>
    %28 = tpu.reciprocal %27 : vector<8x1xf32> -> vector<8x1xf32>
    %29 = vector.broadcast %28 : vector<8x1xf32> to vector<8x8xf32>
    %30 = arith.mulf %25, %29 : vector<8x8xf32>
    %cst_21 = arith.constant dense<0.000000e+00> : vector<8x8xf32>
    %31 = tpu.matmul %30, %17, %cst_21 {dimension_numbers = #tpu.dot_dimension_numbers<[1], [0], [0], [1], [0, 0, 1, 1], [], []>} : vector<8x8xf32>, vector<8x8xf32>, vector<8x8xf32> -> vector<8x8xf32>
    %32 = vector.extract_strided_slice %4 {offsets = [0, 8], sizes = [8, 8], strides = [1, 1]} : vector<8x128xf32> to vector<8x8xf32>
    %33 = vector.extract_strided_slice %9 {offsets = [0, 8], sizes = [8, 8], strides = [1, 1]} : vector<8x128xf32> to vector<8x8xf32>
    %34 = vector.extract_strided_slice %14 {offsets = [0, 8], sizes = [8, 8], strides = [1, 1]} : vector<8x128xf32> to vector<8x8xf32>
    %cst_22 = arith.constant dense<0.000000e+00> : vector<8x8xf32>
    %35 = tpu.matmul %32, %33, %cst_22 {dimension_numbers = #tpu.dot_dimension_numbers<[1], [1], [0], [0], [0, 0, 1, 0], [], []>} : vector<8x8xf32>, vector<8x8xf32>, vector<8x8xf32> -> vector<8x8xf32>
    %cst_23 = arith.constant 0.176776692 : f32
    %36 = vector.broadcast %cst_23 : f32 to vector<8x8xf32>
    %37 = arith.mulf %35, %36 : vector<8x8xf32>
    %cst_24 = arith.constant dense<0xFF800000> : vector<8xf32>
    %38 = vector.multi_reduction <maximumf>, %37, %cst_24 [1] : vector<8x8xf32> to vector<8xf32>
    %39 = vector.shape_cast %38 : vector<8xf32> to vector<8x1xf32>
    %40 = vector.broadcast %39 : vector<8x1xf32> to vector<8x8xf32>
    %41 = arith.subf %37, %40 : vector<8x8xf32>
    %42 = math.exp %41 : vector<8x8xf32>
    %cst_25 = arith.constant dense<0.000000e+00> : vector<8xf32>
    %43 = vector.multi_reduction <add>, %42, %cst_25 [1] : vector<8x8xf32> to vector<8xf32>
    %44 = vector.shape_cast %43 : vector<8xf32> to vector<8x1xf32>
    %45 = tpu.reciprocal %44 : vector<8x1xf32> -> vector<8x1xf32>
    %46 = vector.broadcast %45 : vector<8x1xf32> to vector<8x8xf32>
    %47 = arith.mulf %42, %46 : vector<8x8xf32>
    %cst_26 = arith.constant dense<0.000000e+00> : vector<8x8xf32>
    %48 = tpu.matmul %47, %34, %cst_26 {dimension_numbers = #tpu.dot_dimension_numbers<[1], [0], [0], [1], [0, 0, 1, 1], [], []>} : vector<8x8xf32>, vector<8x8xf32>, vector<8x8xf32> -> vector<8x8xf32>
    %49 = vector.extract_strided_slice %4 {offsets = [0, 16], sizes = [8, 8], strides = [1, 1]} : vector<8x128xf32> to vector<8x8xf32>
    %50 = vector.extract_strided_slice %9 {offsets = [0, 16], sizes = [8, 8], strides = [1, 1]} : vector<8x128xf32> to vector<8x8xf32>
    %51 = vector.extract_strided_slice %14 {offsets = [0, 16], sizes = [8, 8], strides = [1, 1]} : vector<8x128xf32> to vector<8x8xf32>
    %cst_27 = arith.constant dense<0.000000e+00> : vector<8x8xf32>
    %52 = tpu.matmul %49, %50, %cst_27 {dimension_numbers = #tpu.dot_dimension_numbers<[1], [1], [0], [0], [0, 0, 1, 0], [], []>} : vector<8x8xf32>, vector<8x8xf32>, vector<8x8xf32> -> vector<8x8xf32>
    %cst_28 = arith.constant 0.176776692 : f32
    %53 = vector.broadcast %cst_28 : f32 to vector<8x8xf32>
    %54 = arith.mulf %52, %53 : vector<8x8xf32>
    %cst_29 = arith.constant dense<0xFF800000> : vector<8xf32>
    %55 = vector.multi_reduction <maximumf>, %54, %cst_29 [1] : vector<8x8xf32> to vector<8xf32>
    %56 = vector.shape_cast %55 : vector<8xf32> to vector<8x1xf32>
    %57 = vector.broadcast %56 : vector<8x1xf32> to vector<8x8xf32>
    %58 = arith.subf %54, %57 : vector<8x8xf32>
    %59 = math.exp %58 : vector<8x8xf32>
    %cst_30 = arith.constant dense<0.000000e+00> : vector<8xf32>
    %60 = vector.multi_reduction <add>, %59, %cst_30 [1] : vector<8x8xf32> to vector<8xf32>
    %61 = vector.shape_cast %60 : vector<8xf32> to vector<8x1xf32>
    %62 = tpu.reciprocal %61 : vector<8x1xf32> -> vector<8x1xf32>
    %63 = vector.broadcast %62 : vector<8x1xf32> to vector<8x8xf32>
    %64 = arith.mulf %59, %63 : vector<8x8xf32>
    %cst_31 = arith.constant dense<0.000000e+00> : vector<8x8xf32>
    %65 = tpu.matmul %64, %51, %cst_31 {dimension_numbers = #tpu.dot_dimension_numbers<[1], [0], [0], [1], [0, 0, 1, 1], [], []>} : vector<8x8xf32>, vector<8x8xf32>, vector<8x8xf32> -> vector<8x8xf32>
    %66 = vector.extract_strided_slice %4 {offsets = [0, 24], sizes = [8, 8], strides = [1, 1]} : vector<8x128xf32> to vector<8x8xf32>
    %67 = vector.extract_strided_slice %9 {offsets = [0, 24], sizes = [8, 8], strides = [1, 1]} : vector<8x128xf32> to vector<8x8xf32>
    %68 = vector.extract_strided_slice %14 {offsets = [0, 24], sizes = [8, 8], strides = [1, 1]} : vector<8x128xf32> to vector<8x8xf32>
    %cst_32 = arith.constant dense<0.000000e+00> : vector<8x8xf32>
    %69 = tpu.matmul %66, %67, %cst_32 {dimension_numbers = #tpu.dot_dimension_numbers<[1], [1], [0], [0], [0, 0, 1, 0], [], []>} : vector<8x8xf32>, vector<8x8xf32>, vector<8x8xf32> -> vector<8x8xf32>
    %cst_33 = arith.constant 0.176776692 : f32
    %70 = vector.broadcast %cst_33 : f32 to vector<8x8xf32>
    %71 = arith.mulf %69, %70 : vector<8x8xf32>
    %cst_34 = arith.constant dense<0xFF800000> : vector<8xf32>
    %72 = vector.multi_reduction <maximumf>, %71, %cst_34 [1] : vector<8x8xf32> to vector<8xf32>
    %73 = vector.shape_cast %72 : vector<8xf32> to vector<8x1xf32>
    %74 = vector.broadcast %73 : vector<8x1xf32> to vector<8x8xf32>
    %75 = arith.subf %71, %74 : vector<8x8xf32>
    %76 = math.exp %75 : vector<8x8xf32>
    %cst_35 = arith.constant dense<0.000000e+00> : vector<8xf32>
    %77 = vector.multi_reduction <add>, %76, %cst_35 [1] : vector<8x8xf32> to vector<8xf32>
    %78 = vector.shape_cast %77 : vector<8xf32> to vector<8x1xf32>
    %79 = tpu.reciprocal %78 : vector<8x1xf32> -> vector<8x1xf32>
    %80 = vector.broadcast %79 : vector<8x1xf32> to vector<8x8xf32>
    %81 = arith.mulf %76, %80 : vector<8x8xf32>
    %cst_36 = arith.constant dense<0.000000e+00> : vector<8x8xf32>
    %82 = tpu.matmul %81, %68, %cst_36 {dimension_numbers = #tpu.dot_dimension_numbers<[1], [0], [0], [1], [0, 0, 1, 1], [], []>} : vector<8x8xf32>, vector<8x8xf32>, vector<8x8xf32> -> vector<8x8xf32>
    %83 = tpu.concatenate %31, %48, %65, %82 in 1 : vector<8x8xf32>, vector<8x8xf32>, vector<8x8xf32>, vector<8x8xf32> -> vector<8x32xf32>
    %c0_37 = arith.constant 0 : index
    %c0_38 = arith.constant 0 : index
    %84 = vector.load %arg3[%c0_37, %c0_38] : memref<40x128xf32, #tpu.memory_space<vmem>>, vector<40x128xf32>
    %85 = vector.extract_strided_slice %84 {offsets = [0, 0], sizes = [32, 128], strides = [1, 1]} : vector<40x128xf32> to vector<32x128xf32>
    %86 = vector.extract_strided_slice %84 {offsets = [32, 0], sizes = [1, 128], strides = [1, 1]} : vector<40x128xf32> to vector<1x128xf32>
    %cst_39 = arith.constant dense<0.000000e+00> : vector<8x128xf32>
    %87 = tpu.matmul %83, %85, %cst_39 {dimension_numbers = #tpu.dot_dimension_numbers<[1], [0], [0], [1], [0, 0, 1, 1], [], []>} : vector<8x32xf32>, vector<32x128xf32>, vector<8x128xf32> -> vector<8x128xf32>
    %88 = vector.broadcast %86 : vector<1x128xf32> to vector<8x128xf32>
    %89 = arith.addf %87, %88 : vector<8x128xf32>
    %c0_40 = arith.constant 0 : index
    %c0_41 = arith.constant 0 : index
    %90 = vector.load %arg4[%c0_40, %c0_41] : memref<8x128xf32, #tpu.memory_space<vmem>>, vector<8x128xf32>
    tpu.vector_store %arg4[%c0_40, %c0_41], %89 {strides = array<i32>} : memref<8x128xf32, #tpu.memory_space<vmem>>, vector<8x128xf32>,
    return
  }
  func.func @transform_0(%arg0: i32) -> (i32, i32, i32) {
    %c0_i32 = arith.constant 0 : i32
    %c0_i32_0 = arith.constant 0 : i32
    %c0_i32_1 = arith.constant 0 : i32
    return %c0_i32, %arg0, %c0_i32_0 : i32, i32, i32
  }
  func.func @transform_1(%arg0: i32) -> (i32, i32, i32) {
    %c0_i32 = arith.constant 0 : i32
    %c0_i32_0 = arith.constant 0 : i32
    %c0_i32_1 = arith.constant 0 : i32
    %c0_i32_2 = arith.constant 0 : i32
    return %c0_i32, %c0_i32_0, %c0_i32_1 : i32, i32, i32
  }
  func.func @transform_2(%arg0: i32) -> (i32, i32) {
    %c0_i32 = arith.constant 0 : i32
    %c0_i32_0 = arith.constant 0 : i32
    %c0_i32_1 = arith.constant 0 : i32
    return %c0_i32, %c0_i32_0 : i32, i32
  }
  func.func @transform_3(%arg0: i32) -> (i32, i32) {
    %c0_i32 = arith.constant 0 : i32
    %c0_i32_0 = arith.constant 0 : i32
    return %arg0, %c0_i32 : i32, i32
  }
}

</mosaic_0001>

<bundles_post_ra>
// kernel: tpu_custom_call.1
= control target key start
LH: loop header
LB: loop body
LE: loop exit
PB: predicated region body
PF: predicated region fallthrough
CT: control target
= control target key end

     0   :  { %8 = vsyncpa [#allocation3], 0  ;;  %s2217_s0 = inlined_call_operand.hbm [shape: f32[3,16,128], index: 0, kind: input, shape index: {}]   ;;  %s2218_s1 = inlined_call_operand.hbm [shape: f32[3,128,128], index: 1, kind: input, shape index: {}]   ;;  %s2219_s2 = inlined_call_operand.hbm [shape: f32[40,128], index: 2, kind: input, shape index: {}]   ;;  %s2220_s3 = inlined_call_operand.hbm [shape: f32[16,128], index: 3, kind: output, shape index: {}]  }
   0x1   :  { %10 = vsyncpa [#allocation3 + $0x1], 0 }
   0x2   :  { %11 = vsyncpa [#allocation6], 0 }
   0x3   :  { %12 = vsyncpa [#allocation4], 0 }
   0x4   :  { %14 = vsyncpa [#allocation4 + $0x1], 0  ;;  %s1885_s12 = smov 0   ;;  %s1887_s13 = smov 0  }
   0x5   :  { %s1889_s14 = smov 0   ;;  %s1891_s15 = smov 0  }
   0x6 LB: > { %s1906_s16 = sadd.s32 4294967295, %s1848_s15   ;;  %s1347_s17 = sadd.s32 4294967294, %s1848_s15   ;;  %s1848_s15 = sphi %s1891_s15, %s2242_s15   ;;  %s1844_s14 = sphi %s1889_s14, %s2241_s14   ;;  %s1840_s13 = sphi %s1887_s13, %s2240_s13   ;;  %s1836_s12 = sphi %s1885_s12, %s2239_s12  }
   0x7   : > { %s1910_s18 = sadd.s32 1, %s1848_s15   ;;  %s27_s19 = sadd.s32 1, %s1844_s14 }
   0x8   : > { %s24_s20 = ssub.s32 %s1848_s15, %s1910_s18  ;;  %p34_p0 = scmp.ne.s32.totalorder %s1844_s14, %s1840_s13 }
   0x9   : > { %p25_p1 = scmp.eq.s32.totalorder %s24_s20, 0  ;;  %p35_p2 = scmp.eq.s32.totalorder %s1848_s15, 0 }
   0xa   : > { %p40_p3 = scmp.ne.s32.totalorder %s1840_s13, %s1836_s12  ;;  %p2222_p4 = scmp.eq.s32.totalorder %s1906_s16, 0 }
   0xb   : > { %s1922_s21 = scalar_select %p25_p1, %s1844_s14, %s27_s19  }
   0xc   : > { %p1924_p5 = por %p35_p2, %p34_p0  ;;  %p1930_p6 = por %p2222_p4, %p40_p3 }
   0xd   : > { %p106_p7 = scmp.eq.s32.totalorder %s1906_s16, 1  ;;  %p112_p8 = scmp.eq.s32.totalorder %s1347_s17, 1 }
   0xe   : > { %s2226_s23 = scalar_select %p1930_p6, 1, 0 }
   0xf   : > { %p1348_p9 = scmp.ge.s32.totalorder %s1848_s15, 1  ;;  %p119_p10 = scmp.lt.s32.totalorder %s1848_s15, 3 }
  0x10   : > { %p1937_p11 = por %p106_p7, %p34_p0  ;;  %p1941_p12 = por %p112_p8, %p40_p3 }
  0x11   : > { %p1945_p13 = pnand %p1348_p9, %p119_p10  ;;  %s1850_s27 = smov [#allocation5]  }
  0x12   : > { %s2227_s24 = scalar_select %p1937_p11, 1, 0 }
  0x13   : > { %s2228_s25 = scalar_select %p1941_p12, 1, 0 }
  0x14   : > { %s2229_s26 = scalar_select %p1945_p13, 1, 0 }
  0x15   : > { %p1618_p1 = pneg %p1945_p13  ;;  %s131_s28 = sshll.u32 %s1850_s27, 4  ;;  %s132_s28 = int_to_ptr.vmem [resolvable:$true] %s131_s28 }
  0x16   : > { %p1635_p3 = scmp.lt.s32.totalorder %s1848_s15, 2  ;;  %s1851_s30 = smov [#allocation7]  }
  0x17   : > { %p1953_p2 = pnand %p1618_p1, %p2222_p4  ;;  %s144_s4 = sshll.u32 %s1851_s30, 4  ;;  %s145_s4 = int_to_ptr.vmem [resolvable:$true] %s144_s4 }
  0x18   : > { %s1711_s5 = scalar_lea.vmem %s132_s28, 6144  ;;  %p1719_p12 = scmp.lt.s32.totalorder %s132_s28, %s132_s28 }
  0x19   : > { %p1702_p7 = pneg %p1953_p2  ;;  %p1712_p8 = scmp.ne.s32.totalorder %s132_s28, %s1711_s5 }
  0x1a   : > { %p1720_p11 = scmp.lt.s32.totalorder %s1711_s5, %s1711_s5 }
  0x1b   : > { %p1714_p9 = pnand %p1712_p8, %p1702_p7 }
  0x1c   : > { %p1721_p1 = por %p1720_p11, %p1719_p12 }
  0x1d   : > { %p1715_p10 = pneg %p1714_p9 }
  0x1f   : > { %p1722_p4 = pnand %p1721_p1, %p1715_p10 }
  0x21   : > { %1725 = shalt.err (!%p1722_p4)
}
  0x22   : > { %s1852_s6 = smov 128   ;;  %s1853_s7 = smov 8  }
  0x23   : > { %1621 = dma.hbm_to_vmem [thread:$0]  (!%p1953_p2), %s2218_s1, 6144, %s132_s28, [#allocation6], %s1852_s6, %s1852_s6, %s1853_s7  }
  0x24   : > { %p1976_p8 = pnand %p1635_p3, %p1924_p5  ;;  %s1737_s11 = scalar_lea.vmem %s145_s4, 640 }
  0x25   : > { %p1738_p4 = scmp.ne.s32.totalorder %s145_s4, %s1737_s11  ;;  %p1745_p9 = scmp.lt.s32.totalorder %s145_s4, %s145_s4 }
  0x26   : > { %p1746_p10 = scmp.lt.s32.totalorder %s1737_s11, %s1737_s11 }
  0x27   : > { %p1740_p11 = pnand %p1738_p4, %p1702_p7 }
  0x28   : > { %p1747_p1 = por %p1746_p10, %p1745_p9 }
  0x29   : > { %p1741_p12 = pneg %p1740_p11 }
  0x2b   : > { %p1748_p0 = pnand %p1747_p1, %p1741_p12 }
  0x2d   : > { %1751 = shalt.err (!%p1748_p0)
}
  0x2e   : > { %1624 = dma.hbm_to_vmem [thread:$0]  (!%p1953_p2), %s2219_s2, 640, %s145_s4, [#allocation6], %s1852_s6, %s1852_s6, %s1853_s7  }
  0x2f   : > { %s158_s20 = sand.u32 1, %s1844_s14   ;;  %s1352_s27 = sshll.u32 %s1848_s15, 7 }
  0x30   : > { %s1604_s22 = smul.u32 24, %s158_s20  ;;  %s1996_s5 = scalar_lea.hbm %s2217_s0, %s1352_s27 }
  0x31   : > { %s2000_s9 = scalar_lea.sflag [#allocation3], %s158_s20  ;;  %s1752_s11 = scalar_lea.hbm %s1996_s5, 384 }
  0x32   : > { %s162_s29 = scalar_lea.vmem [#allocation2], %s1604_s22  ;;  %p1753_p5 = scmp.ne.s32.totalorder %s1996_s5, %s1752_s11 }
  0x33   : > { %s168_s8 = sshll.u32 %s162_s29, 4  ;;  %p1754_p2 = pneg %p1976_p8  ;;  %s1998_s8 = int_to_ptr.vmem [resolvable:$true] %s168_s8 }
  0x34   : > { %s1757_s19 = scalar_lea.hbm %s2217_s0, 768  ;;  %p1758_p7 = scmp.lt.s32.totalorder %s1996_s5, %s2217_s0 }
  0x35   : > { %p1755_p0 = pnand %p1754_p2, %p1753_p5  ;;  %p1759_p4 = scmp.lt.s32.totalorder %s1757_s19, %s1752_s11 }
  0x37   : > { %p1756_p3 = pneg %p1755_p0  ;;  %p1760_p11 = por %p1759_p4, %p1758_p7 }
  0x39   : > { %p1761_p12 = pnand %p1760_p11, %p1756_p3 }
  0x3b   : > { %1764 = shalt.err (!%p1761_p12)
}
  0x3c   : > { %s1765_s20 = scalar_lea.vmem %s1998_s8, 384  ;;  %s1854_s22 = smov [#allocation2]  }
  0x3d   : > { %p1766_p9 = scmp.ne.s32.totalorder %s1998_s8, %s1765_s20  ;;  %s1770_s30 = sshll.u32 %s1854_s22, 4  ;;  %s1771_s30 = int_to_ptr.vmem [resolvable:$false] %s1770_s30 }
  0x3e   : > { %s1772_s29 = scalar_lea.vmem %s1771_s30, 768  ;;  %p1773_p5 = scmp.lt.s32.totalorder %s1998_s8, %s1771_s30 }
  0x3f   : > { %p1768_p10 = pnand %p1766_p9, %p1754_p2  ;;  %p1774_p0 = scmp.lt.s32.totalorder %s1772_s29, %s1765_s20 }
  0x41   : > { %p1769_p1 = pneg %p1768_p10  ;;  %p1775_p6 = por %p1774_p0, %p1773_p5 }
  0x43   : > { %p1776_p13 = pnand %p1775_p6, %p1769_p1 }
  0x45   : > { %1779 = shalt.err (!%p1776_p13)
}
  0x46   : > { %s1855_s11 = smov 256   ;;  %p2232_p2 = scmp.ne.s32.totalorder %s2229_s26, 0 }
  0x47   : > { %1628 = dma.hbm_to_vmem [thread:$0]  (!%p1976_p8), %s1996_s5, 384, %s1998_s8, %s2000_s9, %s1855_s11, %s1852_s6, %s1853_s7  }
  0x48   : > { %180 = sbr.rel (%p2232_p2) target bundleno = 2868 (0xb34), region = 32  ;;  %s2026_s4 = sand.u32 (!%p2232_p2), 1, %s1840_s13  }
  0x49   : > { %s1605_s17 = smul.u32 (!%p2232_p2), 24, %s2026_s4  ;;  %s183_s19 = scalar_lea.sflag (!%p2232_p2), [#allocation3], %s2026_s4 }
  0x4a   : > { %p2233_p6 = scmp.ne.s32.totalorder (!%p2232_p2), %s2226_s23, 0 }
  0x4b   : > { %s2030_s27 = scalar_lea.vmem (!%p2232_p2), [#allocation2], %s1605_s17 }
  0x4d   : > { %1823 = dma.done.wait (%p2233_p6), %s183_s19, 384  }
  0x4e   : > { %1825 = vsyncadd (%p2233_p6), %s183_s19, 4294966912  ;;  %p2234_p13 = scmp.eq.s32.totalorder %s1906_s16, 0 }
  0x50   : > { %1827 = dma.done.wait (%p2234_p13), [#allocation6], 6784   ;;  %p2235_p8 = pmov %p2234_p13 }
  0x51   : > { %v1856_v0 = vmov 0.0   ;;  %vm1857_vm0 = vmmov 0   ;;  %v322_v1 = vld [vmem:[#allocation5 + $0xf8] sm:$0xff]  ;;  %v321_v3 = vld [vmem:[#allocation5 + $0xf0] sm:$0xff]  ;;  %v320_v5 = vld [vmem:[#allocation5 + $0xe8] sm:$0xff]  ;;  %vm482_vm1 = vcmask 64512  }
  0x52   : > { %1829 = vsyncadd (%p2235_p8), [#allocation6], 4294960512  ;;  %1483 = vmatprep.subr.mxu1 %v1856_v0  ;;  %1448 = vmatprep.subr.mxu0 %v1856_v0  ;;  %v233_v2 = vld [vmem:[#allocation5 + $0x78] sm:$0xff]  ;;  %v232_v4 = vld [vmem:[#allocation5 + $0x70] sm:$0xff]  ;;  %s1858_s23 = smov 120   ;;  %s1859_s26 = smov 112  }
  0x53   : > { %1515 = vmatprep.mubr.msk.f32.mxu1 %vm1857_vm0, %v1856_v0  ;;  %1480 = vmatprep.mubr.msk.f32.mxu0 %vm1857_vm0, %v1856_v0  ;;  %v231_v6 = vld [vmem:[#allocation5 + $0x68] sm:$0xff]  ;;  %v319_v7 = vld [vmem:[#allocation5 + $0xe0] sm:$0xff]  ;;  %v318_v9 = vld [vmem:[#allocation5 + $0xd8] sm:$0xff]  ;;  %s1860_s6 = smov 104   ;;  %s1861_s7 = smov 8   ;;  %vm1156_vm2 = vcmask 130048  }
  0x54   : > { %1484 = vmatpush3.msra.mxu1 %v322_v1  ;;  %1449 = vmatpush3.msra.mxu0 %v233_v2  ;;  %v230_v8 = vld [vmem:[#allocation5 + $0x60] sm:$0xff]  ;;  %v229_v10 = vld [vmem:[#allocation5 + $0x58] sm:$0xff]  ;;  %v317_v11 = vld [vmem:[#allocation5 + $0xd0] sm:$0xff]  ;;  %s1862_s10 = smov 16   ;;  %s1863_s5 = smov 24   ;;  %vm1158_vm3 = vcmask 195584  }
  0x55   : > { %1485 = vmatprep.subr.mxu1 %v1856_v0  ;;  %1450 = vmatprep.subr.mxu0 %v1856_v0  ;;  %v228_v12 = vld [vmem:[#allocation5 + $0x50] sm:$0xff]  ;;  %v316_v13 = vld [vmem:[#allocation5 + $0xc8] sm:$0xff]  ;;  %v315_v15 = vld [vmem:[#allocation5 + $0xc0] sm:$0xff]  ;;  %vm1169_vm4 = vcmask 261120   ;;  %s1356_s8 = sshll.u32 %s2026_s4, 3  ;;  %s1373_s9 = sshll.u32 %s1906_s16, 7 }
  0x56   : > { %1486 = vmatpush3.msra.mxu1 %v321_v3  ;;  %1451 = vmatpush3.msra.mxu0 %v232_v4  ;;  %v227_v14 = vld [vmem:[#allocation5 + $0x48] sm:$0xff]  ;;  %v226_v16 = vld [vmem:[#allocation5 + $0x40] sm:$0xff]  ;;  %v314_v17 = vld [vmem:[#allocation5 + $0xb8] sm:$0xff]  ;;  %s216_s28 = scalar_lea.vmem [#allocation8], %s1356_s8  ;;  %s2180_s29 = scalar_lea.hbm %s2220_s3, %s1373_s9 }
  0x57   : > { %1487 = vmatprep.subr.mxu1 %v1856_v0  ;;  %1452 = vmatprep.subr.mxu0 %v1856_v0  ;;  %v225_v18 = vld [vmem:[#allocation5 + $0x38] sm:$0xff]  ;;  %v313_v19 = vld [vmem:[#allocation5 + $0xb0] sm:$0xff]  ;;  %v312_v21 = vld [vmem:[#allocation5 + $0xa8] sm:$0xff]  ;;  %s1258_s20 = sshll.u32 %s216_s28, 4  ;;  %s1245_s11 = scalar_lea.sflag [#allocation4], %s2026_s4  ;;  %s1259_s20 = int_to_ptr.vmem [resolvable:$true] %s1258_s20 }
  0x58   : > { %1488 = vmatpush3.msra.mxu1 %v320_v5  ;;  %1453 = vmatpush3.msra.mxu0 %v231_v6  ;;  %v224_v20 = vld [vmem:[#allocation5 + $0x30] sm:$0xff]  ;;  %v223_v22 = vld [vmem:[#allocation5 + $0x28] sm:$0xff]  ;;  %v311_v23 = vld [vmem:[#allocation5 + $0xa0] sm:$0xff]  ;;  %s1780_s17 = scalar_lea.vmem %s1259_s20, 128  ;;  %p2236_p7 = scmp.ne.s32.totalorder %s2227_s24, 0 }
  0x59   : > { %1489 = vmatprep.subr.mxu1 %v1856_v0  ;;  %1454 = vmatprep.subr.mxu0 %v1856_v0  ;;  %v222_v24 = vld [vmem:[#allocation5 + $0x20] sm:$0xff]  ;;  %v310_v25 = vld [vmem:[#allocation5 + $0x98] sm:$0xff]  ;;  %v309_v27 = vld [vmem:[#allocation5 + $0x90] sm:$0xff]  ;;  %p1781_p3 = scmp.ne.s32.totalorder %s1259_s20, %s1780_s17  ;;  %s1864_s19 = smov [#allocation8]  }
  0x5a   : > { %1490 = vmatpush3.msra.mxu1 %v319_v7  ;;  %1455 = vmatpush3.msra.mxu0 %v230_v8  ;;  %v221_v26 = vld [vmem:[#allocation5 + $0x18] sm:$0xff]  ;;  %v220_v28 = vld [vmem:[#allocation5 + $0x10] sm:$0xff]  ;;  %v308_v29 = vld [vmem:[#allocation5 + $0x88] sm:$0xff]  ;;  %s1784_s16 = sshll.u32 %s1864_s19, 4  ;;  %s1785_s16 = int_to_ptr.vmem [resolvable:$false] %s1784_s16 }
  0x5b   : > { %1491 = vmatprep.subr.mxu1 %v1856_v0  ;;  %1456 = vmatprep.subr.mxu0 %v1856_v0  ;;  %v219_v30 = vld [vmem:[#allocation5 + $0x8] sm:$0xff]  ;;  %v307_v31 = vld [vmem:[#allocation5 + $0x80] sm:$0xff]  ;;  %v1357_v33 = vld [vmem:[%s2030_s27 + $0x8] sm:$0xff]  ;;  %p1782_p4 = pnand %p1781_p3, %p2236_p7  ;;  %p1787_p12 = scmp.lt.s32.totalorder %s1259_s20, %s1785_s16 }
  0x5c   : > { %1492 = vmatpush3.msra.mxu1 %v318_v9  ;;  %1457 = vmatpush3.msra.mxu0 %v229_v10  ;;  %v218_v32 = vld [vmem:[#allocation5] sm:$0xff]  ;;  %v217_v34 = vld [vmem:[%s2030_s27] sm:$0xff]  ;;  %v411_v39 = vld [vmem:[#allocation5 + $0x178] sm:$0xff] }
  0x5d   : > { %1493 = vmatprep.subr.mxu1 %v1856_v0  ;;  %1458 = vmatprep.subr.mxu0 %v1856_v0  ;;  %v410_v40 = vld [vmem:[#allocation5 + $0x170] sm:$0xff]  ;;  %v409_v41 = vld [vmem:[#allocation5 + $0x168] sm:$0xff]  ;;  %v408_v42 = vld [vmem:[#allocation5 + $0x160] sm:$0xff]  ;;  %p1783_p11 = pneg %p1782_p4 }
  0x5e   : > { %1494 = vmatpush3.msra.mxu1 %v317_v11  ;;  %1459 = vmatpush3.msra.mxu0 %v228_v12  ;;  %v407_v43 = vld [vmem:[#allocation5 + $0x158] sm:$0xff]  ;;  %v406_v44 = vld [vmem:[#allocation5 + $0x150] sm:$0xff]  ;;  %v405_v45 = vld [vmem:[#allocation5 + $0x148] sm:$0xff] }
  0x5f   : > { %1495 = vmatprep.subr.mxu1 %v1856_v0  ;;  %1460 = vmatprep.subr.mxu0 %v1856_v0  ;;  %v404_v46 = vld [vmem:[#allocation5 + $0x140] sm:$0xff]  ;;  %v403_v47 = vld [vmem:[#allocation5 + $0x138] sm:$0xff]  ;;  %v402_v48 = vld [vmem:[#allocation5 + $0x130] sm:$0xff] }
  0x60   : > { %1496 = vmatpush3.msra.mxu1 %v316_v13  ;;  %1461 = vmatpush3.msra.mxu0 %v227_v14  ;;  %v401_v49 = vld [vmem:[#allocation5 + $0x128] sm:$0xff]  ;;  %v400_v50 = vld [vmem:[#allocation5 + $0x120] sm:$0xff]  ;;  %v399_v51 = vld [vmem:[#allocation5 + $0x118] sm:$0xff] }
  0x61   : > { %1497 = vmatprep.subr.mxu1 %v1856_v0  ;;  %1462 = vmatprep.subr.mxu0 %v1856_v0  ;;  %v398_v52 = vld [vmem:[#allocation5 + $0x110] sm:$0xff]  ;;  %v397_v53 = vld [vmem:[#allocation5 + $0x108] sm:$0xff]  ;;  %v396_v54 = vld [vmem:[#allocation5 + $0x100] sm:$0xff] }
  0x62   : > { %1498 = vmatpush3.msra.mxu1 %v315_v15  ;;  %1463 = vmatpush3.msra.mxu0 %v226_v16  ;;  %v1358_v55 = vld [vmem:[%s2030_s27 + $0x10] sm:$0xff]  ;;  %s1786_s27 = scalar_lea.vmem %s1785_s16, 256 }
  0x63   : > { %1499 = vmatprep.subr.mxu1 %v1856_v0  ;;  %1464 = vmatprep.subr.mxu0 %v1856_v0  ;;  %p1788_p9 = scmp.lt.s32.totalorder %s1786_s27, %s1780_s17 }
  0x64   : > { %1500 = vmatpush3.msra.mxu1 %v314_v17  ;;  %1465 = vmatpush3.msra.mxu0 %v225_v18 }
  0x65   : > { %1501 = vmatprep.subr.mxu1 %v1856_v0  ;;  %1466 = vmatprep.subr.mxu0 %v1856_v0  ;;  %p1789_p10 = por %p1788_p9, %p1787_p12 }
  0x66   : > { %1502 = vmatpush3.msra.mxu1 %v313_v19  ;;  %1467 = vmatpush3.msra.mxu0 %v224_v20 }
  0x67   : > { %1503 = vmatprep.subr.mxu1 %v1856_v0  ;;  %1468 = vmatprep.subr.mxu0 %v1856_v0  ;;  %p1790_p1 = pnand %p1789_p10, %p1783_p11 }
  0x68   : > { %1504 = vmatpush3.msra.mxu1 %v312_v21  ;;  %1469 = vmatpush3.msra.mxu0 %v223_v22 }
  0x69   : > { %1505 = vmatprep.subr.mxu1 %v1856_v0  ;;  %1470 = vmatprep.subr.mxu0 %v1856_v0 }
  0x6a   : > { %1506 = vmatpush3.msra.mxu1 %v311_v23  ;;  %1471 = vmatpush3.msra.mxu0 %v222_v24 }
  0x6b   : > { %1507 = vmatprep.subr.mxu1 %v1856_v0  ;;  %1472 = vmatprep.subr.mxu0 %v1856_v0 }
  0x6c   : > { %1508 = vmatpush3.msra.mxu1 %v310_v25  ;;  %1473 = vmatpush3.msra.mxu0 %v221_v26 }
  0x6d   : > { %1509 = vmatprep.subr.mxu1 %v1856_v0  ;;  %1474 = vmatprep.subr.mxu0 %v1856_v0 }
  0x6e   : > { %1510 = vmatpush3.msra.mxu1 %v309_v27  ;;  %1475 = vmatpush3.msra.mxu0 %v220_v28 }
  0x6f   : > { %1511 = vmatprep.subr.mxu1 %v1856_v0  ;;  %1476 = vmatprep.subr.mxu0 %v1856_v0 }
  0x70   : > { %1512 = vmatpush3.msra.mxu1 %v308_v29  ;;  %1477 = vmatpush3.msra.mxu0 %v219_v30 }
  0x71   : > { %1513 = vmatprep.subr.mxu1 %v1856_v0  ;;  %1478 = vmatprep.subr.mxu0 %v1856_v0 }
  0x72   : > { %1514 = vmatpush3.msra.mxu1 %v307_v31  ;;  %1479 = vmatpush3.msra.mxu0 %v218_v32 }
  0x73   : > { %1516 = vmatmul.mubr.f32.vlgmr.msra.gmra.mxu1 %v1357_v33  ;;  %1481 = vmatmul.mubr.f32.vlgmr.msra.gmra.mxu0 %v217_v34 }
  0x74   : > { %1553 = vmatprep.subr.mxu1 %v1856_v0  ;;  %1555 = vmatprep.mubr.msk.f32.mxu1 %vm1857_vm0, %v1856_v0 }
  0x75   : > { %1518 = vmatprep.subr.mxu0 %v1856_v0  ;;  %1550 = vmatprep.mubr.msk.f32.mxu0 %vm1857_vm0, %v1856_v0 }
  0x76   : > { %1519 = vmatpush3.msra.mxu0 %v411_v39 }
  0x77   : > { %1520 = vmatprep.subr.mxu0 %v1856_v0 }
  0x78   : > { %1521 = vmatpush3.msra.mxu0 %v410_v40 }
  0x79   : > { %1522 = vmatprep.subr.mxu0 %v1856_v0 }
  0x7a   : > { %1523 = vmatpush3.msra.mxu0 %v409_v41 }
  0x7b   : > { %1524 = vmatprep.subr.mxu0 %v1856_v0 }
  0x7c   : > { %1525 = vmatpush3.msra.mxu0 %v408_v42 }
  0x7d   : > { %1526 = vmatprep.subr.mxu0 %v1856_v0 }
  0x7e   : > { %1527 = vmatpush3.msra.mxu0 %v407_v43 }
  0x7f   : > { %1528 = vmatprep.subr.mxu0 %v1856_v0 }
  0x80   : > { %1529 = vmatpush3.msra.mxu0 %v406_v44 }
  0x81   : > { %1530 = vmatprep.subr.mxu0 %v1856_v0 }
  0x82   : > { %1531 = vmatpush3.msra.mxu0 %v405_v45 }
  0x83   : > { %1532 = vmatprep.subr.mxu0 %v1856_v0 }
  0x84   : > { %1533 = vmatpush3.msra.mxu0 %v404_v46 }
  0x85   : > { %1534 = vmatprep.subr.mxu0 %v1856_v0 }
  0x86   : > { %1535 = vmatpush3.msra.mxu0 %v403_v47 }
  0x87   : > { %1536 = vmatprep.subr.mxu0 %v1856_v0 }
  0x88   : > { %1537 = vmatpush3.msra.mxu0 %v402_v48 }
  0x89   : > { %1538 = vmatprep.subr.mxu0 %v1856_v0 }
  0x8a   : > { %1539 = vmatpush3.msra.mxu0 %v401_v49 }
  0x8b   : > { %1540 = vmatprep.subr.mxu0 %v1856_v0 }
  0x8c   : > { %1541 = vmatpush3.msra.mxu0 %v400_v50 }
  0x8d   : > { %1542 = vmatprep.subr.mxu0 %v1856_v0 }
  0x8e   : > { %1543 = vmatpush3.msra.mxu0 %v399_v51 }
  0x8f   : > { %1544 = vmatprep.subr.mxu0 %v1856_v0 }
  0x90   : > { %1545 = vmatpush3.msra.mxu0 %v398_v52 }
  0x91   : > { %1546 = vmatprep.subr.mxu0 %v1856_v0 }
  0x92   : > { %1547 = vmatpush3.msra.mxu0 %v397_v53 }
  0x93   : > { %1548 = vmatprep.subr.mxu0 %v1856_v0 }
  0x94   : > { %1549 = vmatpush3.msra.mxu0 %v396_v54 }
  0x95   : > { %1551 = vmatmul.mubr.f32.vlgmr.msra.gmra.mxu0 %v1358_v55  ;;  %1593 = vmatprep.subr.mxu0 %v1856_v0 }
  0x96   : > { %1601 = vmatprep.mubr.msk.f32.mxu0 %vm1857_vm0, %v1856_v0 }
 0x133   : > { %v2084_v35 = vpop.f32.mrf.mxu1  ;;  %v2086_v36 = vpop.f32.mrf.mxu0 }
 0x134   : > { %646 = vrot.lane.b32.xlu1 %v2084_v35, %s1858_s23  ;;  %1554 = vmatpush3.xpose.msk.msra.mxu1 %vm482_vm1, %v2084_v35 }
 0x135   : > { %v1517_v37 = vpop.f32.mrf.mxu1  ;;  %v1482_v38 = vpop.f32.mrf.mxu0  ;;  %1558 = vmatprep.subr.mxu1 %v1856_v0 }
 0x137   : > { %1556 = vmatmul.mubr.msk.f32.vlgmr.msra.gmra.mxu1 %vm482_vm1, %v2086_v36 }
 0x138   : > { %644 = vrot.lane.b32.xlu1 %v2086_v36, %s1858_s23  ;;  %1560 = vmatprep.mubr.msk.f32.mxu1 %vm1857_vm0, %v1856_v0 }
 0x155   : > { %v2120_v2 = vpop.f32.mrf.mxu0 }
 0x156   : > { %1559 = vmatpush3.msra.mxu1 %v2120_v2 }
 0x157   : > { %v1552_v3 = vpop.f32.mrf.mxu0  ;;  %1563 = vmatprep.subr.mxu1 %v1856_v0 }
 0x1a6   : > { %v647_v6 = vpop.permute.xlu1 %646 }
 0x1aa   : > { %v645_v8 = vpop.permute.xlu1 %644 }
 0x1f7   : > { %v555_v56 = vpop.f32.mrf.mxu1 }
 0x1f8   : > { %v559_v57 = vmul.f32 0.17677669, %v555_v56 }
 0x1f9   : > { %v1557_v58 = vpop.f32.mrf.mxu1 }
 0x1fa   : > { %v560_v59 = vsel %vm482_vm1, %v559_v57, -inf  ;;  %v1163_v58 = vld [vmem:[#allocation7 + $0x18] sm:$0xff] }
 0x1fb   : > { %561 = vmax.xlane.f32.xlu0 %v560_v59  ;;  %v1162_v59 = vld [vmem:[#allocation7 + $0x10] sm:$0xff]  ;;  %1594 = vmatpush3.msra.mxu0 %v1163_v58 }
 0x1fc   : > { %1595 = vmatprep.subr.mxu0 %v1856_v0 }
 0x1fd   : > { %1596 = vmatpush3.msra.mxu0 %v1162_v59 }
 0x1fe   : > { %1597 = vmatprep.subr.mxu0 %v1856_v0 }
 0x284   : > { %v562_v60 = vpop.xlane.xlu0 %561 }
 0x285   : > { %v563_v61 = vsub.f32 %v559_v57, %v562_v60  ;;  %v1161_v60 = vld [vmem:[#allocation7 + $0x8] sm:$0xff] }
 0x286   : > { %1598 = vmatpush3.msra.mxu0 %v1161_v60 }
 0x287   : > { %v564_v62 = vmul.f32 1.442695, %v563_v61  ;;  %1599 = vmatprep.subr.mxu0 %v1856_v0  ;;  %v1160_v61 = vld [vmem:[#allocation7] sm:$0xff] }
 0x288   : > { %1600 = vmatpush3.msra.mxu0 %v1160_v61 }
 0x289   : > { %1684 = vpow2.f32 %v564_v62 }
 0x296   : > { %v1685_v63 = vpop.eup %1684 }
 0x297   : > { %v566_v1 = vsel %vm482_vm1, %v1685_v63, 0.0 }
 0x298   : > { %567 = vadd.xlane.f32.xlu0 %v566_v1 }
 0x321   : > { %v568_v4 = vpop.xlane.xlu0 %567 }
 0x322   : > { %1686 = vrcp.f32 %v568_v4 }
 0x32f   : > { %v1687_v5 = vpop.eup %1686 }
 0x330   : > { %v570_v7 = vmul.f32 %v1687_v5, %v1685_v63 }
 0x332   : > { %1561 = vmatmul.mubr.msk.f32.vlgmr.msra.gmra.mxu1 %vm482_vm1, %v570_v7 }
 0x333   : > { %1564 = vmatpush3.xpose.msk.msra.mxu1 %vm482_vm1, %v647_v6  ;;  %1565 = vmatprep.mubr.msk.f32.mxu1 %vm1857_vm0, %v1856_v0 }
 0x334   : > { %1568 = vmatprep.subr.mxu1 %v1856_v0 }
 0x336   : > { %1566 = vmatmul.mubr.msk.f32.vlgmr.msra.gmra.mxu1 %vm482_vm1, %v645_v8 }
 0x337   : > { %1570 = vmatprep.mubr.msk.f32.mxu1 %vm1857_vm0, %v1856_v0 }
 0x3f2   : > { %v2132_v9 = vpop.f32.mrf.mxu1 }
 0x3f4   : > { %v1562_v10 = vpop.f32.mrf.mxu1 }
 0x3f5   : > { %v1164_v10 = vld [vmem:[#allocation7 + $0x20] sm:$0xff] }
 0x3f6   : > { %v718_v11 = vpop.f32.mrf.mxu1 }
 0x3f7   : > { %v722_v12 = vmul.f32 0.17677669, %v718_v11 }
 0x3f8   : > { %v1567_v13 = vpop.f32.mrf.mxu1 }
 0x3f9   : > { %v723_v14 = vsel %vm482_vm1, %v722_v12, -inf }
 0x3fa   : > { %724 = vmax.xlane.f32.xlu0 %v723_v14 }
 0x410   : > { %735 = vrot.lane.b32.xlu0 %v2120_v2, %s1858_s23 }
 0x414   : > { %813 = vrot.lane.b32.xlu0 %v2084_v35, %s1859_s26 }
 0x418   : > { %811 = vrot.lane.b32.xlu0 %v2086_v36, %s1859_s26 }
 0x483   : > { %v725_v15 = vpop.xlane.xlu0 %724 }
 0x484   : > { %v726_v16 = vsub.f32 %v722_v12, %v725_v15 }
 0x486   : > { %v727_v17 = vmul.f32 1.442695, %v726_v16 }
 0x487   : > { %v736_v18 = vpop.permute.xlu0 %735 }
 0x488   : > { %1688 = vpow2.f32 %v727_v17  ;;  %1569 = vmatpush3.msra.mxu1 %v736_v18 }
 0x489   : > { %1573 = vmatprep.subr.mxu1 %v1856_v0 }
 0x48b   : > { %v814_v23 = vpop.permute.xlu0 %813 }
 0x48f   : > { %v812_v25 = vpop.permute.xlu0 %811 }
 0x495   : > { %v1689_v19 = vpop.eup %1688 }
 0x496   : > { %v729_v20 = vsel %vm482_vm1, %v1689_v19, 0.0 }
 0x497   : > { %730 = vadd.xlane.f32.xlu1 %v729_v20 }
 0x4a8   : > { %901 = vrot.lane.b32.xlu1 %v2120_v2, %s1859_s26 }
 0x4ac   : > { %979 = vrot.lane.b32.xlu1 %v2084_v35, %s1860_s6 }
 0x520   : > { %v731_v21 = vpop.xlane.xlu1 %730 }
 0x521   : > { %1690 = vrcp.f32 %v731_v21 }
 0x524   : > { %v902_v26 = vpop.permute.xlu1 %901 }
 0x528   : > { %v980_v39 = vpop.permute.xlu1 %979 }
 0x52e   : > { %v1691_v22 = vpop.eup %1690 }
 0x52f   : > { %v733_v24 = vmul.f32 %v1691_v22, %v1689_v19 }
 0x531   : > { %1571 = vmatmul.mubr.msk.f32.vlgmr.msra.gmra.mxu1 %vm482_vm1, %v733_v24 }
 0x532   : > { %1574 = vmatpush3.xpose.msk.msra.mxu1 %vm482_vm1, %v814_v23  ;;  %1575 = vmatprep.mubr.msk.f32.mxu1 %vm1857_vm0, %v1856_v0 }
 0x533   : > { %1578 = vmatprep.subr.mxu1 %v1856_v0 }
 0x535   : > { %1576 = vmatmul.mubr.msk.f32.vlgmr.msra.gmra.mxu1 %vm482_vm1, %v812_v25 }
 0x536   : > { %1579 = vmatpush3.msra.mxu1 %v902_v26  ;;  %1580 = vmatprep.mubr.msk.f32.mxu1 %vm1857_vm0, %v1856_v0 }
 0x537   : > { %1583 = vmatprep.subr.mxu1 %v1856_v0 }
 0x5f1   : > { %v807_v27 = vpop.f32.mrf.mxu1 }
 0x5f3   : > { %v1572_v28 = vpop.f32.mrf.mxu1 }
 0x5f5   : > { %v885_v29 = vpop.f32.mrf.mxu1 }
 0x5f6   : > { %v889_v30 = vmul.f32 0.17677669, %v885_v29 }
 0x5f7   : > { %v1577_v31 = vpop.f32.mrf.mxu1 }
 0x5f8   : > { %v890_v32 = vsel %vm482_vm1, %v889_v30, -inf }
 0x5f9   : > { %891 = vmax.xlane.f32.xlu0 %v890_v32 }
 0x682   : > { %v892_v33 = vpop.xlane.xlu0 %891 }
 0x683   : > { %v893_v34 = vsub.f32 %v889_v30, %v892_v33 }
 0x685   : > { %v894_v35 = vmul.f32 1.442695, %v893_v34 }
 0x687   : > { %1692 = vpow2.f32 %v894_v35 }
 0x694   : > { %v1693_v37 = vpop.eup %1692 }
 0x695   : > { %v896_v38 = vsel %vm482_vm1, %v1693_v37, 0.0 }
 0x696   : > { %897 = vadd.xlane.f32.xlu1 %v896_v38 }
 0x6a7   : > { %977 = vrot.lane.b32.xlu1 %v2086_v36, %s1860_s6 }
 0x71f   : > { %v898_v40 = vpop.xlane.xlu1 %897 }
 0x720   : > { %1694 = vrcp.f32 %v898_v40 }
 0x723   : > { %v978_v43 = vpop.permute.xlu1 %977 }
 0x72d   : > { %v1695_v41 = vpop.eup %1694 }
 0x72e   : > { %v900_v42 = vmul.f32 %v1695_v41, %v1693_v37 }
 0x730   : > { %1581 = vmatmul.mubr.msk.f32.vlgmr.msra.gmra.mxu1 %vm482_vm1, %v900_v42 }
 0x731   : > { %1584 = vmatpush3.xpose.msk.msra.mxu1 %vm482_vm1, %v980_v39  ;;  %1585 = vmatprep.mubr.msk.f32.mxu1 %vm1857_vm0, %v1856_v0 }
 0x732   : > { %1588 = vmatprep.subr.mxu1 %v1856_v0 }
 0x734   : > { %1586 = vmatmul.mubr.msk.f32.vlgmr.msra.gmra.mxu1 %vm482_vm1, %v978_v43 }
 0x735   : > { %1590 = vmatprep.mubr.msk.f32.mxu1 %vm1857_vm0, %v1856_v0  ;;  %v1165_v0 = vlaneseq }
 0x737   : > { %v1166_v7 = vshrl.u32 %v1165_v0, 7 }
 0x739   : > { %v1167_v8 = vsub.s32 0, %v1166_v7 }
 0x73b   : > { %v1168_v11 = vrot.slane %v1164_v10, %v1167_v8 }
 0x7f0   : > { %v973_v36 = vpop.f32.mrf.mxu1 }
 0x7f2   : > { %v1582_v44 = vpop.f32.mrf.mxu1 }
 0x7f4   : > { %v1051_v45 = vpop.f32.mrf.mxu1 }
 0x7f5   : > { %v1055_v46 = vmul.f32 0.17677669, %v1051_v45 }
 0x7f6   : > { %v1587_v47 = vpop.f32.mrf.mxu1 }
 0x7f7   : > { %v1056_v48 = vsel %vm482_vm1, %v1055_v46, -inf }
 0x7f8   : > { %1057 = vmax.xlane.f32.xlu0 %v1056_v48 }
 0x80e   : > { %1067 = vrot.lane.b32.xlu0 %v2120_v2, %s1860_s6 }
 0x812   : > { %1144 = vrot.lane.b32.xlu0 %v807_v27, %s1861_s7 }
 0x816   : > { %1148 = vrot.lane.b32.xlu0 %v973_v36, %s1862_s10 }
 0x881   : > { %v1058_v49 = vpop.xlane.xlu0 %1057 }
 0x882   : > { %v1059_v50 = vsub.f32 %v1055_v46, %v1058_v49 }
 0x884   : > { %v1060_v51 = vmul.f32 1.442695, %v1059_v50 }
 0x885   : > { %v1068_v52 = vpop.permute.xlu0 %1067 }
 0x886   : > { %1696 = vpow2.f32 %v1060_v51  ;;  %1589 = vmatpush3.msra.mxu1 %v1068_v52 }
 0x889   : > { %v1145_v1 = vpop.permute.xlu0 %1144 }
 0x88a   : > { %v1155_v3 = vsel %vm482_vm1, %v2132_v9, %v1145_v1 }
 0x88d   : > { %v1149_v2 = vpop.permute.xlu0 %1148 }
 0x88e   : > { %v1157_v4 = vsel %vm1156_vm2, %v1155_v3, %v1149_v2 }
 0x893   : > { %v1697_v53 = vpop.eup %1696 }
 0x894   : > { %v1062_v54 = vsel %vm482_vm1, %v1697_v53, 0.0 }
 0x895   : > { %1063 = vadd.xlane.f32.xlu1 %v1062_v54 }
 0x91e   : > { %v1064_v55 = vpop.xlane.xlu1 %1063 }
 0x91f   : > { %1698 = vrcp.f32 %v1064_v55 }
 0x92c   : > { %v1699_v56 = vpop.eup %1698 }
 0x92d   : > { %v1066_v57 = vmul.f32 %v1699_v56, %v1697_v53 }
 0x92f   : > { %1591 = vmatmul.mubr.msk.f32.vlgmr.msra.gmra.mxu1 %vm482_vm1, %v1066_v57 }
 0x9ef   : > { %v1139_v62 = vpop.f32.mrf.mxu1 }
 0x9f0   : > { %1152 = vrot.lane.b32.xlu0 %v1139_v62, %s1863_s5 }
 0x9f1   : > { %v1592_v63 = vpop.f32.mrf.mxu1 }
 0xa62   : > { %v1153_v5 = vpop.permute.xlu0 %1152 }
 0xa63   : > { %v1159_v6 = vsel %vm1158_vm3, %v1157_v4, %v1153_v5 }
 0xa64   : > { %1602 = vmatmul.mubr.msk.f32.vlgmr.msra.gmra.mxu0 %vm1169_vm4, %v1159_v6 }
 0xb24   : > { %v1239_v12 = vpop.f32.mrf.mxu0 }
 0xb25   : > { %v1240_v13 = vadd.f32 %v1239_v12, %v1168_v11 }
 0xb26   : > { %v1603_v9 = vpop.f32.mrf.mxu0 }
 0xb27   : > { %1243 = vst [vmem:[%s216_s28] sm:$0xff] %v1240_v13 }
 0xb28   : > { %1793 = shalt.err (!%p1790_p1)
}
 0xb29   : > { %s1794_s23 = scalar_lea.hbm %s2180_s29, 128  ;;  %s1798_s6 = scalar_lea.hbm %s2220_s3, 256 }
 0xb2a   : > { %p1795_p5 = scmp.ne.s32.totalorder %s2180_s29, %s1794_s23  ;;  %p1799_p6 = scmp.lt.s32.totalorder %s2180_s29, %s2220_s3 }
 0xb2b   : > { %p1800_p13 = scmp.lt.s32.totalorder %s1798_s6, %s1794_s23 }
 0xb2c   : > { %p1796_p0 = pnand %p1795_p5, %p2236_p7 }
 0xb2d   : > { %p1801_p8 = por %p1800_p13, %p1799_p6 }
 0xb2e   : > { %p1797_p2 = pneg %p1796_p0 }
 0xb30   : > { %p1802_p3 = pnand %p1801_p8, %p1797_p2 }
 0xb32   : > { %1805 = shalt.err (!%p1802_p3)
}
 0xb33   : > { %1616 = dma.vmem_to_hbm [thread:$0]  (%p2236_p7), %s1259_s20, 128, %s2180_s29, %s1245_s11  }
 0xb34 PF: > { %s1270_s5 = sand.u32 1, %s1836_s12   ;;  %p2237_p4 = scmp.ne.s32.totalorder %s2228_s25, 0 }
 0xb35   : > { %p2238_p11 = scmp.ge.s32.totalorder %s1848_s15, 2  ;;  %s1271_s8 = scalar_lea.sflag [#allocation4], %s1270_s5 }
 0xb37   : > { %p1630_p12 = pnand %p2238_p11, %p2237_p4 }
 0xb39   : > { %p1631_p9 = pneg %p1630_p12 }
 0xb3b   : > { %1831 = dma.done.wait (%p1631_p9), %s1271_s8, 128  }
 0xb3c   : > { %1833 = vsyncadd (%p1631_p9), %s1271_s8, 4294967168  ;;  %p17_p10 = scmp.ge.s32.totalorder %s1910_s18, 4   ;;  %s2239_s12 = smov %s1840_s13 }
 0xb3d   : > { %s2240_s13 = smov %s1844_s14  ;;  %s2241_s14 = smov %s1922_s21 }
 0xb3e   : > { %s2242_s15 = smov %s1910_s18  ;;  %19 = sbr.rel (!%p17_p10) target bundleno = 6 (0x6), region = 89 }
 0xb43   :  { %1276 = vsyncpa [#allocation3], 1 }
 0xb44   :  { %1278 = vsyncpa [#allocation3 + $0x1], 1 }
 0xb45   :  { %1279 = vsyncpa [#allocation6], 1 }
 0xb46   :  { %1280 = vsyncpa [#allocation4], 1 }
 0xb47   :  { %1282 = vsyncpa [#allocation4 + $0x1], 1 }

</bundles_post_ra>
